<compile_context>
chip_gen: v7x
topology: tpu7x:2x2x1
jax: 0.10.0
libtpu: 0.0.40
codegen_flags: <defaults>
</compile_context>

<pallas_src>
import functools

import jax
import jax.numpy as jnp
from jax.experimental import pallas as pl
from jax.experimental.pallas import tpu as pltpu


def _round_up(a: int, m: int) -> int:
    return (a + m - 1) // m * m


# --------------- resident-weight path (W1/W2 fully in VMEM) -----------------
def mlp_kernel_resident(x_ref, w1_ref, b1_ref, w2_ref, b2_ref, o_ref):
    # x_ref : (tT, E) f32    w1_ref: (E, H) bf16    b1_ref: (1, H) f32
    # w2_ref: (H, E) bf16    b2_ref: (1, E) f32     o_ref : (tT, E) f32
    x = x_ref[...].astype(w1_ref.dtype)               # f32 -> bf16 on VPU
    h = jnp.dot(x, w1_ref[...], preferred_element_type=jnp.float32)
    h = jnp.maximum(h + b1_ref[...], 0.0)
    o_ref[...] = (jnp.dot(h.astype(w2_ref.dtype), w2_ref[...],
                          preferred_element_type=jnp.float32)
                  + b2_ref[...]).astype(o_ref.dtype)


# --------------- streaming path (hidden dim tiled / reduced) ----------------
def mlp_kernel_tiled(x_ref, w1_ref, b1_ref, w2_ref, b2_ref, o_ref):
    # x_ref : (tT, E) f32    w1_ref: (E, tH) bf16   b1_ref: (1, tH) f32
    # w2_ref: (tH, E) bf16   b2_ref: (1, E)  f32    o_ref : (tT, E) f32
    # o_ref's block index is (i, 0) for every hidden step j, so the output tile
    # is VMEM-resident across the whole reduction: accumulate directly into it,
    # seeding with b2 at step 0 (no scratch accumulator, no finalize copy).
    j = pl.program_id(1)

    @pl.when(j == 0)
    def _init():
        o_ref[...] = jnp.broadcast_to(b2_ref[...], o_ref.shape).astype(o_ref.dtype)

    x = x_ref[...].astype(w1_ref.dtype)               # f32 -> bf16 on VPU
    h = jnp.dot(x, w1_ref[...], preferred_element_type=jnp.float32)
    h = jnp.maximum(h + b1_ref[...], 0.0)
    o_ref[...] += jnp.dot(h.astype(w2_ref.dtype), w2_ref[...],
                          preferred_element_type=jnp.float32).astype(o_ref.dtype)


@functools.partial(jax.jit, static_argnames=("tile_t", "tile_h"))
def mlp_forward(x, w1, b1, w2, b2, *, tile_t: int = 512, tile_h: int = 512):
    """x: (B, S, E) -> (B, S, E). Weights may be pre-cast to bf16 by the caller."""
    B, S, E = x.shape
    H = w1.shape[1]                        # 4 * E
    T = B * S

    # Token tile: lane / MXU aligned (multiple of 128).
    tT = min(tile_t, _round_up(T, 128))
    T_pad = _round_up(T, tT)

    x2 = x.reshape(T, E).astype(jnp.float32)
    if T_pad != T:                         # padded rows are sliced off at the end
        x2 = jnp.pad(x2, ((0, T_pad - T), (0, 0)))

    # Only cast if the caller did not already pass bf16 weights (hot-path callers
    # should pre-cast once to avoid a per-call HBM pass over the weights).
    w1b = w1 if w1.dtype == jnp.bfloat16 else w1.astype(jnp.bfloat16)
    w2b = w2 if w2.dtype == jnp.bfloat16 else w2.astype(jnp.bfloat16)
    b1_2 = b1.reshape(1, H).astype(jnp.float32)
    b2_2 = b2.reshape(1, E).astype(jnp.float32)

    H_pad = _round_up(H, 128)
    if H_pad != H:                         # relu(0 + b1_pad=0) @ 0 contributes 0
        w1b = jnp.pad(w1b, ((0, 0), (0, H_pad - H)))
        b1_2 = jnp.pad(b1_2, ((0, 0), (0, H_pad - H)))
        w2b = jnp.pad(w2b, ((0, H_pad - H), (0, 0)))

    n_t = T_pad // tT

    # VMEM footprint if W1/W2 stay fully resident (double-buffered bf16 weights
    # + f32 x/out tiles + f32/bf16 hidden intermediate + biases).
    resident_bytes = (
        4 * E * H_pad * 2
        + 4 * tT * E * 4
        + 6 * tT * H_pad
        + 8 * (H_pad + E)
    )
    use_resident = resident_bytes <= (40 << 20)

    if use_resident:
        cost = pl.CostEstimate(
            flops=4 * T_pad * E * H_pad,
            transcendentals=0,
            bytes_accessed=2 * T_pad * E * 4                     # x in + y out (f32)
            + (w1b.size + w2b.size) * 2                          # weights once
            + (b1_2.size + b2_2.size) * 4,
        )
        out2 = pl.pallas_call(
            mlp_kernel_resident,
            out_shape=jax.ShapeDtypeStruct((T_pad, E), jnp.float32),
            grid_spec=pltpu.PrefetchScalarGridSpec(
                num_scalar_prefetch=0,
                grid=(n_t,),
                in_specs=[
                    pl.BlockSpec((tT, E), lambda i: (i, 0)),       # x tile
                    pl.BlockSpec((E, H_pad), lambda i: (0, 0)),    # W1 (resident)
                    pl.BlockSpec((1, H_pad), lambda i: (0, 0)),    # b1 (resident)
                    pl.BlockSpec((H_pad, E), lambda i: (0, 0)),    # W2 (resident)
                    pl.BlockSpec((1, E), lambda i: (0, 0)),        # b2 (resident)
                ],
                out_specs=pl.BlockSpec((tT, E), lambda i: (i, 0)),
            ),
            compiler_params=pltpu.CompilerParams(
                # TODO(synk): on v7x consider pltpu.CORE_PARALLEL on the token axis
                # to split the grid across the 2 TensorCores explicitly.
                dimension_semantics=("parallel",),
                vmem_limit_bytes=64 << 20,
            ),
            cost_estimate=cost,
        )(x2, w1b, b1_2, w2b, b2_2)
    else:
        tH = min(tile_h, H_pad)
        H_pad2 = _round_up(H_pad, tH)      # no-op when tH divides H (typical E)
        if H_pad2 != H_pad:
            w1b = jnp.pad(w1b, ((0, 0), (0, H_pad2 - H_pad)))
            b1_2 = jnp.pad(b1_2, ((0, 0), (0, H_pad2 - H_pad)))
            w2b = jnp.pad(w2b, ((0, H_pad2 - H_pad), (0, 0)))
        H_pad = H_pad2
        n_h = H_pad // tH

        cost = pl.CostEstimate(
            flops=4 * T_pad * E * H_pad,
            transcendentals=0,
            # W1/W2 are re-streamed once per token tile on this path.
            bytes_accessed=2 * T_pad * E * 4
            + (w1b.size + w2b.size) * 2 * n_t
            + (b1_2.size * n_t + b2_2.size) * 4,
        )
        out2 = pl.pallas_call(
            mlp_kernel_tiled,
            out_shape=jax.ShapeDtypeStruct((T_pad, E), jnp.float32),
            grid_spec=pltpu.PrefetchScalarGridSpec(
                num_scalar_prefetch=0,
                grid=(n_t, n_h),                                  # reduction axis last
                in_specs=[
                    pl.BlockSpec((tT, E), lambda i, j: (i, 0)),   # x tile
                    pl.BlockSpec((E, tH), lambda i, j: (0, j)),   # W1 column block
                    pl.BlockSpec((1, tH), lambda i, j: (0, j)),   # b1 chunk
                    pl.BlockSpec((tH, E), lambda i, j: (j, 0)),   # W2 row block
                    pl.BlockSpec((1, E), lambda i, j: (0, 0)),    # b2
                ],
                out_specs=pl.BlockSpec((tT, E), lambda i, j: (i, 0)),
            ),
            compiler_params=pltpu.CompilerParams(
                dimension_semantics=("parallel", "arbitrary"),
                vmem_limit_bytes=64 << 20,                        # fits v5e/v6e/v7x
            ),
            cost_estimate=cost,
        )(x2, w1b, b1_2, w2b, b2_2)

    return out2[:T].reshape(B, S, E).astype(x.dtype)


if __name__ == "__main__":
    # Small shapes consistent with the module's forward: (batch, seq, emb_dim).
    B, S, E = 2, 8, 32
    H = 4 * E

    key = jax.random.PRNGKey(0)
    kx, kw1, kb1, kw2, kb2 = jax.random.split(key, 5)

    x = jax.random.normal(kx, (B, S, E), dtype=jnp.float32)
    w1 = jax.random.normal(kw1, (E, H), dtype=jnp.float32) * (1.0 / E**0.5)
    b1 = jax.random.normal(kb1, (H,), dtype=jnp.float32) * 0.01
    w2 = jax.random.normal(kw2, (H, E), dtype=jnp.float32) * (1.0 / H**0.5)
    b2 = jax.random.normal(kb2, (E,), dtype=jnp.float32) * 0.01

    out = mlp_forward(x, w1, b1, w2, b2)
    out = jax.block_until_ready(out)

    # Reference with the same bf16-input / f32-accumulate numerics as the kernel.
    xb = x.reshape(-1, E).astype(jnp.bfloat16).astype(jnp.float32)
    w1b = w1.astype(jnp.bfloat16).astype(jnp.float32)
    w2b = w2.astype(jnp.bfloat16).astype(jnp.float32)
    h_ref = jnp.maximum(xb @ w1b + b1, 0.0)
    h_ref = h_ref.astype(jnp.bfloat16).astype(jnp.float32)
    ref = (h_ref @ w2b + b2).reshape(B, S, E)

    assert out.shape == (B, S, E)
    assert jnp.allclose(out, ref, atol=2e-2, rtol=2e-2)

    print("KERNEL_OK")
</pallas_src>

<mosaic_0001>
module attributes {stable_mosaic.version = 11 : i64} {
  func.func @mlp_kernel_resident(%arg0: i32, %arg1: memref<128x32xf32, #tpu.memory_space<vmem>>, %arg2: memref<32x128xbf16, #tpu.memory_space<vmem>>, %arg3: memref<1x128xf32, #tpu.memory_space<vmem>>, %arg4: memref<128x32xbf16, #tpu.memory_space<vmem>>, %arg5: memref<1x32xf32, #tpu.memory_space<vmem>>, %arg6: memref<128x32xf32, #tpu.memory_space<vmem>>) attributes {dimension_semantics = [#tpu.dimension_semantics<parallel>], iteration_bounds = array<i64: 1>, scalar_prefetch = 0 : i64, scratch_operands = 0 : i64, tpu.core_type = #tpu.core_type<tc>, window_params = [{transform_indices = @transform_0, window_bounds = array<i64: 128, 32>}, {pipeline_mode = #tpu.pipeline_mode<synchronous>, transform_indices = @transform_1, window_bounds = array<i64: 32, 128>}, {pipeline_mode = #tpu.pipeline_mode<synchronous>, transform_indices = @transform_2, window_bounds = array<i64: 1, 128>}, {pipeline_mode = #tpu.pipeline_mode<synchronous>, transform_indices = @transform_3, window_bounds = array<i64: 128, 32>}, {pipeline_mode = #tpu.pipeline_mode<synchronous>, transform_indices = @transform_4, window_bounds = array<i64: 1, 32>}, {transform_indices = @transform_5, window_bounds = array<i64: 128, 32>}]} {
    %c0 = arith.constant 0 : index
    %c0_0 = arith.constant 0 : index
    %0 = vector.load %arg1[%c0, %c0_0] : memref<128x32xf32, #tpu.memory_space<vmem>>, vector<128x32xf32>
    %1 = arith.truncf %0 : vector<128x32xf32> to vector<128x32xbf16>
    %c0_1 = arith.constant 0 : index
    %c0_2 = arith.constant 0 : index
    %2 = vector.load %arg2[%c0_1, %c0_2] : memref<32x128xbf16, #tpu.memory_space<vmem>>, vector<32x128xbf16>
    %cst = arith.constant dense<0.000000e+00> : vector<128x128xf32>
    %3 = tpu.matmul %1, %2, %cst {dimension_numbers = #tpu.dot_dimension_numbers<[1], [0], [0], [1], [0, 0, 1, 1], [], []>} : vector<128x32xbf16>, vector<32x128xbf16>, vector<128x128xf32> -> vector<128x128xf32>
    %c0_3 = arith.constant 0 : index
    %c0_4 = arith.constant 0 : index
    %4 = vector.load %arg3[%c0_3, %c0_4] : memref<1x128xf32, #tpu.memory_space<vmem>>, vector<1x128xf32>
    %5 = vector.broadcast %4 : vector<1x128xf32> to vector<128x128xf32>
    %6 = arith.addf %3, %5 : vector<128x128xf32>
    %cst_5 = arith.constant 0.000000e+00 : f32
    %7 = vector.broadcast %cst_5 : f32 to vector<128x128xf32>
    %8 = arith.maximumf %6, %7 : vector<128x128xf32>
    %9 = arith.truncf %8 : vector<128x128xf32> to vector<128x128xbf16>
    %c0_6 = arith.constant 0 : index
    %c0_7 = arith.constant 0 : index
    %10 = vector.load %arg4[%c0_6, %c0_7] : memref<128x32xbf16, #tpu.memory_space<vmem>>, vector<128x32xbf16>
    %cst_8 = arith.constant dense<0.000000e+00> : vector<128x32xf32>
    %11 = tpu.matmul %9, %10, %cst_8 {dimension_numbers = #tpu.dot_dimension_numbers<[1], [0], [0], [1], [0, 0, 1, 1], [], []>} : vector<128x128xbf16>, vector<128x32xbf16>, vector<128x32xf32> -> vector<128x32xf32>
    %c0_9 = arith.constant 0 : index
    %c0_10 = arith.constant 0 : index
    %12 = vector.load %arg5[%c0_9, %c0_10] : memref<1x32xf32, #tpu.memory_space<vmem>>, vector<1x32xf32>
    %13 = vector.broadcast %12 : vector<1x32xf32> to vector<128x32xf32>
    %14 = arith.addf %11, %13 : vector<128x32xf32>
    %c0_11 = arith.constant 0 : index
    %c0_12 = arith.constant 0 : index
    %15 = vector.load %arg6[%c0_11, %c0_12] : memref<128x32xf32, #tpu.memory_space<vmem>>, vector<128x32xf32>
    tpu.vector_store %arg6[%c0_11, %c0_12], %14 {strides = array<i32>} : memref<128x32xf32, #tpu.memory_space<vmem>>, vector<128x32xf32>,
    return
  }
  func.func @transform_0(%arg0: i32) -> (i32, i32) {
    %c0_i32 = arith.constant 0 : i32
    %c0_i32_0 = arith.constant 0 : i32
    return %arg0, %c0_i32 : i32, i32
  }
  func.func @transform_1(%arg0: i32) -> (i32, i32) {
    %c0_i32 = arith.constant 0 : i32
    %c0_i32_0 = arith.constant 0 : i32
    %c0_i32_1 = arith.constant 0 : i32
    return %c0_i32, %c0_i32_0 : i32, i32
  }
  func.func @transform_2(%arg0: i32) -> (i32, i32) {
    %c0_i32 = arith.constant 0 : i32
    %c0_i32_0 = arith.constant 0 : i32
    %c0_i32_1 = arith.constant 0 : i32
    return %c0_i32, %c0_i32_0 : i32, i32
  }
  func.func @transform_3(%arg0: i32) -> (i32, i32) {
    %c0_i32 = arith.constant 0 : i32
    %c0_i32_0 = arith.constant 0 : i32
    %c0_i32_1 = arith.constant 0 : i32
    return %c0_i32, %c0_i32_0 : i32, i32
  }
  func.func @transform_4(%arg0: i32) -> (i32, i32) {
    %c0_i32 = arith.constant 0 : i32
    %c0_i32_0 = arith.constant 0 : i32
    %c0_i32_1 = arith.constant 0 : i32
    return %c0_i32, %c0_i32_0 : i32, i32
  }
  func.func @transform_5(%arg0: i32) -> (i32, i32) {
    %c0_i32 = arith.constant 0 : i32
    %c0_i32_0 = arith.constant 0 : i32
    return %arg0, %c0_i32 : i32, i32
  }
}

</mosaic_0001>

<bundles_post_ra>
// kernel: mlp_forward.1
= control target key start
LH: loop header
LB: loop body
LE: loop exit
PB: predicated region body
PF: predicated region fallthrough
CT: control target
= control target key end

     0   :  { %10 = vsyncpa [#allocation3], 0  ;;  %s898_s0 = inlined_call_operand.hbm [shape: f32[128,32], index: 0, kind: input, shape index: {}]   ;;  %s899_s1 = inlined_call_operand.hbm [shape: bf16[32,128], index: 1, kind: input, shape index: {}]   ;;  %s900_s2 = inlined_call_operand.hbm [shape: f32[1,128], index: 2, kind: input, shape index: {}]   ;;  %s901_s3 = inlined_call_operand.hbm [shape: bf16[128,32], index: 3, kind: input, shape index: {}]   ;;  %s902_s4 = inlined_call_operand.hbm [shape: f32[1,32], index: 4, kind: input, shape index: {}]   ;;  %s903_s5 = inlined_call_operand.hbm [shape: f32[128,32], index: 5, kind: output, shape index: {}]  }
   0x1   :  { %11 = vsyncpa [#allocation6], 0 }
   0x2   :  { %12 = vsyncpa [#allocation9], 0 }
   0x3   :  { %13 = vsyncpa [#allocation4], 0  ;;  %s756_s18 = smov [#allocation5]   ;;  %s616_s22 = scalar_lea.hbm %s899_s1, 256 }
   0x4   :  { %s31_s19 = sshll.u32 %s756_s18, 4  ;;  %p617_p0 = scmp.ne.s32.totalorder %s899_s1, %s616_s22  ;;  %s32_s19 = int_to_ptr.vmem [resolvable:$true] %s31_s19 }
   0x5   :  { %p620_p1 = scmp.lt.u32.totalorder %s616_s22, %s899_s1 }
   0x7   :  { %p622_p2 = pnand %p620_p1, %p617_p0 }
   0x9   :  { %625 = shalt.err (!%p622_p2)
}
   0xa   :  { %s626_s27 = scalar_lea.vmem %s32_s19, 256  ;;  %p631_p4 = scmp.lt.s32.totalorder %s32_s19, %s32_s19 }
   0xb   :  { %p627_p3 = scmp.ne.s32.totalorder %s32_s19, %s626_s27  ;;  %p632_p5 = scmp.lt.s32.totalorder %s626_s27, %s626_s27 }
   0xd   :  { %p633_p6 = por %p632_p5, %p631_p4 }
   0xf   :  { %p634_p7 = pnand %p633_p6, %p627_p3 }
  0x11   :  { %637 = shalt.err (!%p634_p7)
}
  0x12   :  { %s757_s28 = smov 64   ;;  %s758_s29 = smov 4  }
  0x13   :  { %37 = dma.hbm_to_vmem [thread:$0]  %s899_s1, 256, %s32_s19, [#allocation6], %s757_s28, %s757_s28, %s758_s29  }
  0x14   :  { %s759_s7 = smov [#allocation8]   ;;  %s760_s9 = smov [#allocation2]  }
  0x15   :  { %s53_s8 = sshll.u32 %s759_s7, 4  ;;  %s19_s10 = sshll.u32 %s760_s9, 4  ;;  %s54_s8 = int_to_ptr.vmem [resolvable:$true] %s53_s8  ;;  %s20_s10 = int_to_ptr.vmem [resolvable:$true] %s19_s10 }
  0x16   :  { %s638_s13 = scalar_lea.hbm %s901_s3, 1024 }
  0x17   :  { %p639_p8 = scmp.ne.s32.totalorder %s901_s3, %s638_s13  ;;  %p642_p9 = scmp.lt.u32.totalorder %s638_s13, %s901_s3 }
  0x19   :  { %p644_p10 = pnand %p642_p9, %p639_p8 }
  0x1b   :  { %647 = shalt.err (!%p644_p10)
}
  0x1c   :  { %s648_s1 = scalar_lea.vmem %s54_s8, 1024  ;;  %p653_p12 = scmp.lt.s32.totalorder %s54_s8, %s54_s8 }
  0x1d   :  { %p649_p11 = scmp.ne.s32.totalorder %s54_s8, %s648_s1  ;;  %p654_p13 = scmp.lt.s32.totalorder %s648_s1, %s648_s1 }
  0x1f   :  { %p655_p0 = por %p654_p13, %p653_p12 }
  0x21   :  { %p656_p1 = pnand %p655_p0, %p649_p11 }
  0x23   :  { %659 = shalt.err (!%p656_p1)
}
  0x24   :  { %59 = dma.hbm_to_vmem [thread:$0]  %s901_s3, 1024, %s54_s8, [#allocation9], %s757_s28, %s757_s28, %s758_s29  }
  0x25   :  { %s660_s22 = scalar_lea.hbm %s898_s0, 2048 }
  0x26   :  { %p661_p2 = scmp.ne.s32.totalorder %s898_s0, %s660_s22  ;;  %p664_p3 = scmp.lt.u32.totalorder %s660_s22, %s898_s0 }
  0x28   :  { %p666_p4 = pnand %p664_p3, %p661_p2 }
  0x2a   :  { %669 = shalt.err (!%p666_p4)
}
  0x2b   :  { %s670_s27 = scalar_lea.vmem %s20_s10, 2048  ;;  %p675_p6 = scmp.lt.s32.totalorder %s20_s10, %s20_s10 }
  0x2c   :  { %p671_p5 = scmp.ne.s32.totalorder %s20_s10, %s670_s27  ;;  %p676_p7 = scmp.lt.s32.totalorder %s670_s27, %s670_s27 }
  0x2e   :  { %p677_p8 = por %p676_p7, %p675_p6 }
  0x30   :  { %p678_p9 = pnand %p677_p8, %p671_p5 }
  0x32   :  { %681 = shalt.err (!%p678_p9)
}
  0x33   :  { %s761_s3 = smov 128   ;;  %s762_s28 = smov 8  }
  0x34   :  { %25 = dma.hbm_to_vmem [thread:$0]  %s898_s0, 2048, %s20_s10, [#allocation3], %s761_s3, %s761_s3, %s762_s28  }
  0x35   :  { %s763_s6 = smov [#allocation7]   ;;  %s764_s8 = smov [#allocation10]  }
  0x36   :  { %s44_s7 = sshll.u32 %s763_s6, 4  ;;  %s66_s9 = sshll.u32 %s764_s8, 4  ;;  %s45_s7 = int_to_ptr.vmem [resolvable:$true] %s44_s7  ;;  %s67_s9 = int_to_ptr.vmem [resolvable:$true] %s66_s9 }
  0x37   :  { %s682_s13 = scalar_lea.hbm %s900_s2, 16 }
  0x38   :  { %p683_p10 = scmp.ne.s32.totalorder %s900_s2, %s682_s13  ;;  %p686_p11 = scmp.lt.u32.totalorder %s682_s13, %s900_s2 }
  0x3a   :  { %p688_p12 = pnand %p686_p11, %p683_p10 }
  0x3c   :  { %691 = shalt.err (!%p688_p12)
}
  0x3d   :  { %s692_s0 = scalar_lea.vmem %s45_s7, 16  ;;  %s696_s10 = scalar_lea.vmem %s45_s7, 32 }
  0x3e   :  { %p693_p13 = scmp.ne.s32.totalorder %s45_s7, %s692_s0  ;;  %p697_p0 = scmp.lt.s32.totalorder %s45_s7, %s45_s7 }
  0x3f   :  { %p698_p1 = scmp.lt.s32.totalorder %s696_s10, %s692_s0 }
  0x41   :  { %p699_p2 = por %p698_p1, %p697_p0 }
  0x43   :  { %p700_p3 = pnand %p699_p2, %p693_p13 }
  0x45   :  { %703 = shalt.err (!%p700_p3)
}
  0x46   :  { %47 = dma.hbm_to_vmem [thread:$0]  %s900_s2, 16, %s45_s7, [#allocation6]  }
  0x47   :  { %s704_s21 = scalar_lea.hbm %s902_s4, 16 }
  0x48   :  { %p705_p4 = scmp.ne.s32.totalorder %s902_s4, %s704_s21  ;;  %p708_p5 = scmp.lt.u32.totalorder %s704_s21, %s902_s4 }
  0x4a   :  { %p710_p6 = pnand %p708_p5, %p705_p4 }
  0x4c   :  { %713 = shalt.err (!%p710_p6)
}
  0x4d   :  { %s714_s26 = scalar_lea.vmem %s67_s9, 16  ;;  %s718_s27 = scalar_lea.vmem %s67_s9, 32 }
  0x4e   :  { %p715_p7 = scmp.ne.s32.totalorder %s67_s9, %s714_s26  ;;  %p719_p8 = scmp.lt.s32.totalorder %s67_s9, %s67_s9 }
  0x4f   :  { %p720_p9 = scmp.lt.s32.totalorder %s718_s27, %s714_s26 }
  0x51   :  { %p721_p10 = por %p720_p9, %p719_p8 }
  0x53   :  { %p722_p11 = pnand %p721_p10, %p715_p7 }
  0x55   :  { %725 = shalt.err (!%p722_p11)
}
  0x56   :  { %69 = dma.hbm_to_vmem [thread:$0]  %s902_s4, 16, %s67_s9, [#allocation9]  }
  0x57   :  { %748 = dma.done.wait [#allocation3], 2048  }
  0x58   :  { %749 = vsyncadd [#allocation3], 4294965248 }
  0x59   :  { %750 = dma.done.wait [#allocation6], 272  }
  0x5a   :  { %751 = vsyncadd [#allocation6], 4294967024 }
  0x5b   :  { %752 = dma.done.wait [#allocation9], 1040  }
  0x5c   :  { %753 = vsyncadd [#allocation9], 4294966256  ;;  %v606_v0 = vld [vmem:[#allocation5] sm:$0xff]   ;;  %v607_v1 = vld [vmem:[#allocation5 + $0x8] sm:$0xff]   ;;  %vm133_vm0 = vcmask 261120   ;;  %s765_s4 = smov [#allocation11]  }
  0x5d   :  { %528 = vmatprep.subr.bf16.mxu0 %v606_v0  ;;  %v86_v2 = vld [vmem:[#allocation2] sm:$0xff]  ;;  %v87_v3 = vld [vmem:[#allocation2 + $0x8] sm:$0xff]  ;;  %v88_v5 = vld [vmem:[#allocation2 + $0x10] sm:$0xff]  ;;  %s468_s30 = sshll.u32 %s765_s4, 4  ;;  %s469_s30 = int_to_ptr.vmem [resolvable:$true] %s468_s30 }
  0x5e   :  { %529 = vmatpush3.bf16.msra.mxu0 %v606_v0  ;;  %v102_v4 = vpack.c.bf16 %v87_v3, %v86_v2  ;;  %v89_v6 = vld [vmem:[#allocation2 + $0x18] sm:$0xff]  ;;  %v90_v7 = vld [vmem:[#allocation2 + $0x20] sm:$0xff]  ;;  %v91_v8 = vld [vmem:[#allocation2 + $0x28] sm:$0xff]  ;;  %s726_s6 = scalar_lea.vmem %s469_s30, 2048  ;;  %p731_p13 = scmp.lt.s32.totalorder %s469_s30, %s469_s30 }
  0x5f   :  { %530 = vmatprep.subr.bf16.mxu0 %v607_v1  ;;  %v103_v9 = vpack.c.bf16 %v89_v6, %v88_v5  ;;  %v104_v10 = vpack.c.bf16 %v91_v8, %v90_v7  ;;  %v608_v11 = vld [vmem:[#allocation8] sm:$0xff]   ;;  %v609_v14 = vld [vmem:[#allocation8 + $0x8] sm:$0xff]   ;;  %v95_v16 = vld [vmem:[#allocation2 + $0x48] sm:$0xff]  ;;  %p727_p12 = scmp.ne.s32.totalorder %s469_s30, %s726_s6  ;;  %p732_p0 = scmp.lt.s32.totalorder %s726_s6, %s726_s6 }
  0x60   :  { %532 = vmatprep.mubr.msk.bf16.mxu0 %vm133_vm0, %v102_v4  ;;  %v92_v12 = vld [vmem:[#allocation2 + $0x30] sm:$0xff]  ;;  %v93_v13 = vld [vmem:[#allocation2 + $0x38] sm:$0xff]  ;;  %v94_v15 = vld [vmem:[#allocation2 + $0x40] sm:$0xff]  ;;  %580 = vmatprep.subr.bf16.mxu1 %v608_v11 }
  0x61   :  { %v610_v17 = vld [vmem:[#allocation8 + $0x10] sm:$0xff]   ;;  %588 = vmatpush3.bf16.msra.mxu1 %v608_v11  ;;  %v105_v18 = vpack.c.bf16 %v93_v13, %v92_v12  ;;  %v106_v19 = vpack.c.bf16 %v95_v16, %v94_v15  ;;  %v611_v20 = vld [vmem:[#allocation8 + $0x18] sm:$0xff]   ;;  %v97_v22 = vld [vmem:[#allocation2 + $0x58] sm:$0xff]  ;;  %p733_p1 = por %p732_p0, %p731_p13 }
  0x62   :  { %531 = vmatpush3.bf16.msra.mxu0 %v607_v1  ;;  %581 = vmatprep.subr.bf16.mxu1 %v609_v14  ;;  %v96_v21 = vld [vmem:[#allocation2 + $0x50] sm:$0xff]  ;;  %v98_v23 = vld [vmem:[#allocation2 + $0x60] sm:$0xff]  ;;  %v99_v24 = vld [vmem:[#allocation2 + $0x68] sm:$0xff] }
  0x63   :  { %548 = vmatprep.subr.bf16.mxu0 %v608_v11  ;;  %v612_v25 = vld [vmem:[#allocation8 + $0x20] sm:$0xff]   ;;  %v107_v26 = vpack.c.bf16 %v97_v22, %v96_v21  ;;  %v108_v27 = vpack.c.bf16 %v99_v24, %v98_v23  ;;  %v613_v28 = vld [vmem:[#allocation8 + $0x28] sm:$0xff]   ;;  %v614_v32 = vld [vmem:[#allocation8 + $0x30] sm:$0xff]   ;;  %p734_p2 = pnand %p733_p1, %p727_p12 }
  0x64   :  { %v100_v29 = vld [vmem:[#allocation2 + $0x70] sm:$0xff]  ;;  %v101_v30 = vld [vmem:[#allocation2 + $0x78] sm:$0xff] }
  0x65   :  { %533 = vmatmul.mubr.msk.bf16.vlgmr.msra.gmra.mrb[0].mxu0 %vm133_vm0, %v103_v9  ;;  %589 = vmatpush3.bf16.msra.mxu1 %v609_v14  ;;  %v109_v31 = vpack.c.bf16 %v101_v30, %v100_v29  ;;  %v615_v33 = vld [vmem:[#allocation8 + $0x38] sm:$0xff]  }
  0x66   :  { %536 = vmatprep.mubr.msk.bf16.mxu0 %vm133_vm0, %v104_v10  ;;  %549 = vmatpush3.bf16.msra.mxu0 %v608_v11  ;;  %v482_v34 = vld [vmem:[#allocation7] ss:$0 sm:$0xff] }
  0x67   :  { %550 = vmatprep.subr.bf16.mxu0 %v609_v14  ;;  %582 = vmatprep.subr.bf16.mxu1 %v610_v17 }
  0x69   :  { %590 = vmatpush3.bf16.msra.mxu1 %v610_v17 }
  0x6a   :  { %551 = vmatpush3.bf16.msra.mxu0 %v609_v14  ;;  %583 = vmatprep.subr.bf16.mxu1 %v611_v20 }
  0x6b   :  { %552 = vmatprep.subr.bf16.mxu0 %v610_v17 }
  0x6d   :  { %537 = vmatmul.mubr.msk.bf16.gmra.mrb[4].mxu0 %vm133_vm0, %v105_v18  ;;  %591 = vmatpush3.bf16.msra.mxu1 %v611_v20 }
  0x6e   :  { %540 = vmatprep.mubr.msk.bf16.mxu0 %vm133_vm0, %v106_v19  ;;  %553 = vmatpush3.bf16.msra.mxu0 %v610_v17 }
  0x6f   :  { %554 = vmatprep.subr.bf16.mxu0 %v611_v20  ;;  %584 = vmatprep.subr.bf16.mxu1 %v612_v25 }
  0x71   :  { %592 = vmatpush3.bf16.msra.mxu1 %v612_v25 }
  0x72   :  { %555 = vmatpush3.bf16.msra.mxu0 %v611_v20  ;;  %585 = vmatprep.subr.bf16.mxu1 %v613_v28 }
  0x73   :  { %556 = vmatprep.subr.bf16.mxu0 %v612_v25 }
  0x75   :  { %541 = vmatmul.mubr.msk.bf16.gmra.mrb[8].mxu0 %vm133_vm0, %v107_v26  ;;  %593 = vmatpush3.bf16.msra.mxu1 %v613_v28 }
  0x76   :  { %544 = vmatprep.mubr.msk.bf16.mxu0 %vm133_vm0, %v108_v27  ;;  %557 = vmatpush3.bf16.msra.mxu0 %v612_v25  ;;  %v493_v27 = vld [vmem:[#allocation10] ss:$0 sm:$0xff] }
  0x77   :  { %558 = vmatprep.subr.bf16.mxu0 %v613_v28  ;;  %586 = vmatprep.subr.bf16.mxu1 %v614_v32 }
  0x79   :  { %594 = vmatpush3.bf16.msra.mxu1 %v614_v32 }
  0x7a   :  { %559 = vmatpush3.bf16.msra.mxu0 %v613_v28  ;;  %587 = vmatprep.subr.bf16.mxu1 %v615_v33 }
  0x7b   :  { %560 = vmatprep.subr.bf16.mxu0 %v614_v32 }
  0x7d   :  { %545 = vmatmul.mubr.msk.bf16.gmra.mrb[12].mxu0 %vm133_vm0, %v109_v31  ;;  %595 = vmatpush3.bf16.msra.mxu1 %v615_v33 }
  0x7e   :  { %561 = vmatpush3.bf16.msra.mxu0 %v614_v32 }
  0x7f   :  { %562 = vmatprep.subr.bf16.mxu0 %v615_v33 }
  0x82   :  { %563 = vmatpush3.bf16.msra.mxu0 %v615_v33 }
 0x138   :  { %v534_v35 = vpop.f32.mrb[0].mxu0 }
 0x139   :  { %v201_v36 = vadd.f32 %v534_v35, %v482_v34  ;;  %v192_v37 = vpop.f32.mrb[1].mxu0 }
 0x13a   :  { %v193_v38 = vadd.f32 %v482_v34, %v192_v37  ;;  %v535_v39 = vpop.f32.mrb[2].mxu0 }
 0x13b   :  { %v204_v40 = vadd.f32 %v535_v39, %v482_v34  ;;  %v195_v41 = vpop.f32.mrb[3].mxu0  ;;  %v257_v43 = vmax.f32 %v201_v36, 0.0 }
 0x13c   :  { %v196_v42 = vadd.f32 %v482_v34, %v195_v41  ;;  %v255_v45 = vmax.f32 %v193_v38, 0.0 }
 0x13d   :  { %v258_v44 = vmax.f32 %v204_v40, 0.0 }
 0x13e   :  { %v256_v46 = vmax.f32 %v196_v42, 0.0 }
 0x13f   :  { %v272_v47 = vpack.c.bf16 %v258_v44, %v257_v43 }
 0x140   :  { %v271_v48 = vpack.c.bf16 %v256_v46, %v255_v45  ;;  %v538_v49 = vpop.f32.mrb[4].mxu0 }
 0x141   :  { %v217_v50 = vadd.f32 %v538_v49, %v482_v34  ;;  %v208_v51 = vpop.f32.mrb[5].mxu0 }
 0x142   :  { %v209_v52 = vadd.f32 %v482_v34, %v208_v51  ;;  %v539_v53 = vpop.f32.mrb[6].mxu0  ;;  %564 = vmatprep.mubr.bf16.mxu0 %v271_v48 }
 0x143   :  { %v220_v54 = vadd.f32 %v539_v53, %v482_v34  ;;  %v211_v55 = vpop.f32.mrb[7].mxu0  ;;  %565 = vmatmul.mubr.bf16.vlgmr.msra.gmra.mrb[16].mxu0 %v272_v47  ;;  %v261_v57 = vmax.f32 %v217_v50, 0.0 }
 0x144   :  { %v212_v56 = vadd.f32 %v482_v34, %v211_v55  ;;  %v259_v59 = vmax.f32 %v209_v52, 0.0 }
 0x145   :  { %v262_v58 = vmax.f32 %v220_v54, 0.0 }
 0x146   :  { %v260_v60 = vmax.f32 %v212_v56, 0.0 }
 0x147   :  { %v274_v61 = vpack.c.bf16 %v262_v58, %v261_v57 }
 0x148   :  { %v542_v62 = vpop.f32.mrb[8].mxu0  ;;  %v273_v63 = vpack.c.bf16 %v260_v60, %v259_v59 }
 0x149   :  { %v233_v0 = vadd.f32 %v542_v62, %v482_v34  ;;  %v224_v1 = vpop.f32.mrb[9].mxu0 }
 0x14a   :  { %v225_v2 = vadd.f32 %v482_v34, %v224_v1  ;;  %v543_v3 = vpop.f32.mrb[10].mxu0  ;;  %568 = vmatprep.mubr.bf16.mxu1 %v273_v63 }
 0x14b   :  { %v236_v4 = vadd.f32 %v543_v3, %v482_v34  ;;  %v227_v5 = vpop.f32.mrb[11].mxu0  ;;  %569 = vmatmul.mubr.bf16.vlgmr.msra.gmra.mrb[0].mxu1 %v274_v61  ;;  %v265_v7 = vmax.f32 %v233_v0, 0.0 }
 0x14c   :  { %v228_v6 = vadd.f32 %v482_v34, %v227_v5  ;;  %v263_v9 = vmax.f32 %v225_v2, 0.0 }
 0x14d   :  { %v266_v8 = vmax.f32 %v236_v4, 0.0 }
 0x14e   :  { %v264_v10 = vmax.f32 %v228_v6, 0.0 }
 0x14f   :  { %v276_v11 = vpack.c.bf16 %v266_v8, %v265_v7 }
 0x150   :  { %v275_v12 = vpack.c.bf16 %v264_v10, %v263_v9  ;;  %v546_v13 = vpop.f32.mrb[12].mxu0 }
 0x151   :  { %v249_v14 = vadd.f32 %v546_v13, %v482_v34  ;;  %v240_v15 = vpop.f32.mrb[13].mxu0 }
 0x152   :  { %v241_v16 = vadd.f32 %v482_v34, %v240_v15  ;;  %v547_v17 = vpop.f32.mrb[14].mxu0  ;;  %572 = vmatprep.mubr.bf16.mxu1 %v275_v12 }
 0x153   :  { %v252_v18 = vadd.f32 %v547_v17, %v482_v34  ;;  %v243_v19 = vpop.f32.mrb[15].mxu0  ;;  %573 = vmatmul.mubr.bf16.gmra.mrb[4].mxu1 %v276_v11  ;;  %v269_v21 = vmax.f32 %v249_v14, 0.0 }
 0x154   :  { %v244_v20 = vadd.f32 %v482_v34, %v243_v19  ;;  %v267_v23 = vmax.f32 %v241_v16, 0.0 }
 0x155   :  { %v270_v22 = vmax.f32 %v252_v18, 0.0 }
 0x156   :  { %v268_v24 = vmax.f32 %v244_v20, 0.0 }
 0x157   :  { %v278_v25 = vpack.c.bf16 %v270_v22, %v269_v21 }
 0x158   :  { %v277_v26 = vpack.c.bf16 %v268_v24, %v267_v23 }
 0x15a   :  { %576 = vmatprep.mubr.bf16.mxu1 %v277_v26 }
 0x15b   :  { %577 = vmatmul.mubr.bf16.gmra.mrb[8].mxu1 %v278_v25 }
 0x216   :  { %v566_v28 = vpop.f32.mrb[16].mxu0 }
 0x217   :  { %v393_v29 = vadd.f32 %v566_v28, %v493_v27  ;;  %v384_v30 = vpop.f32.mrb[17].mxu0 }
 0x218   :  { %v385_v31 = vadd.f32 %v493_v27, %v384_v30  ;;  %v567_v32 = vpop.f32.mrb[18].mxu0 }
 0x219   :  { %449 = vst.msk [vmem:[#allocation11 + $0x10] sm:$0xff] %vm133_vm0, %v393_v29  ;;  %v396_v33 = vadd.f32 %v567_v32, %v493_v27  ;;  %v387_v35 = vpop.f32.mrb[19].mxu0 }
 0x21a   :  { %447 = vst.msk [vmem:[#allocation11] sm:$0xff] %vm133_vm0, %v385_v31  ;;  %v388_v34 = vadd.f32 %v493_v27, %v387_v35 }
 0x21b   :  { %450 = vst.msk [vmem:[#allocation11 + $0x18] sm:$0xff] %vm133_vm0, %v396_v33 }
 0x21c   :  { %448 = vst.msk [vmem:[#allocation11 + $0x8] sm:$0xff] %vm133_vm0, %v388_v34 }
 0x21e   :  { %v570_v36 = vpop.f32.mrb[0].mxu1 }
 0x21f   :  { %v409_v37 = vadd.f32 %v570_v36, %v493_v27  ;;  %v400_v38 = vpop.f32.mrb[1].mxu1 }
 0x220   :  { %v401_v39 = vadd.f32 %v493_v27, %v400_v38  ;;  %v571_v40 = vpop.f32.mrb[2].mxu1 }
 0x221   :  { %453 = vst.msk [vmem:[#allocation11 + $0x30] sm:$0xff] %vm133_vm0, %v409_v37  ;;  %v412_v41 = vadd.f32 %v571_v40, %v493_v27  ;;  %v403_v42 = vpop.f32.mrb[3].mxu1 }
 0x222   :  { %451 = vst.msk [vmem:[#allocation11 + $0x20] sm:$0xff] %vm133_vm0, %v401_v39  ;;  %v404_v43 = vadd.f32 %v493_v27, %v403_v42 }
 0x223   :  { %454 = vst.msk [vmem:[#allocation11 + $0x38] sm:$0xff] %vm133_vm0, %v412_v41 }
 0x224   :  { %452 = vst.msk [vmem:[#allocation11 + $0x28] sm:$0xff] %vm133_vm0, %v404_v43 }
 0x226   :  { %v574_v44 = vpop.f32.mrb[4].mxu1 }
 0x227   :  { %v425_v45 = vadd.f32 %v574_v44, %v493_v27  ;;  %v416_v46 = vpop.f32.mrb[5].mxu1 }
 0x228   :  { %v417_v47 = vadd.f32 %v493_v27, %v416_v46  ;;  %v575_v48 = vpop.f32.mrb[6].mxu1 }
 0x229   :  { %457 = vst.msk [vmem:[#allocation11 + $0x50] sm:$0xff] %vm133_vm0, %v425_v45  ;;  %v428_v49 = vadd.f32 %v575_v48, %v493_v27  ;;  %v419_v50 = vpop.f32.mrb[7].mxu1 }
 0x22a   :  { %455 = vst.msk [vmem:[#allocation11 + $0x40] sm:$0xff] %vm133_vm0, %v417_v47  ;;  %v420_v51 = vadd.f32 %v493_v27, %v419_v50 }
 0x22b   :  { %458 = vst.msk [vmem:[#allocation11 + $0x58] sm:$0xff] %vm133_vm0, %v428_v49 }
 0x22c   :  { %456 = vst.msk [vmem:[#allocation11 + $0x48] sm:$0xff] %vm133_vm0, %v420_v51 }
 0x22e   :  { %v578_v52 = vpop.f32.mrb[8].mxu1 }
 0x22f   :  { %v441_v53 = vadd.f32 %v578_v52, %v493_v27  ;;  %v432_v54 = vpop.f32.mrb[9].mxu1 }
 0x230   :  { %v433_v55 = vadd.f32 %v493_v27, %v432_v54  ;;  %v579_v56 = vpop.f32.mrb[10].mxu1 }
 0x231   :  { %461 = vst.msk [vmem:[#allocation11 + $0x70] sm:$0xff] %vm133_vm0, %v441_v53  ;;  %v444_v57 = vadd.f32 %v579_v56, %v493_v27  ;;  %v435_v58 = vpop.f32.mrb[11].mxu1 }
 0x232   :  { %459 = vst.msk [vmem:[#allocation11 + $0x60] sm:$0xff] %vm133_vm0, %v433_v55  ;;  %v436_v59 = vadd.f32 %v493_v27, %v435_v58 }
 0x233   :  { %462 = vst.msk [vmem:[#allocation11 + $0x78] sm:$0xff] %vm133_vm0, %v444_v57 }
 0x234   :  { %460 = vst.msk [vmem:[#allocation11 + $0x68] sm:$0xff] %vm133_vm0, %v436_v59 }
 0x235   :  { %737 = shalt.err (!%p734_p2)
}
 0x236   :  { %s738_s9 = scalar_lea.hbm %s903_s5, 2048 }
 0x237   :  { %p739_p3 = scmp.ne.s32.totalorder %s903_s5, %s738_s9  ;;  %p742_p4 = scmp.lt.u32.totalorder %s738_s9, %s903_s5 }
 0x239   :  { %p744_p5 = pnand %p742_p4, %p739_p3 }
 0x23b   :  { %747 = shalt.err (!%p744_p5)
}
 0x23c   :  { %474 = dma.vmem_to_hbm [thread:$0]  %s469_s30, 2048, %s903_s5, [#allocation4], %s761_s3, %s761_s3, %s762_s28  }
 0x23d   :  { %754 = dma.done.wait [#allocation4], 2048  }
 0x23e   :  { %755 = vsyncadd [#allocation4], 4294965248 }
 0x23f   :  { %478 = vsyncpa [#allocation3], 1 }
 0x240   :  { %479 = vsyncpa [#allocation6], 1 }
 0x241   :  { %480 = vsyncpa [#allocation9], 1 }
 0x242   :  { %481 = vsyncpa [#allocation4], 1 }

</bundles_post_ra>
